<compile_context>
chip_gen: v7x
topology: tpu7x:2x2x1
jax: 0.10.0
libtpu: 0.0.40
codegen_flags: <defaults>
</compile_context>

<pallas_src>
import jax
import jax.numpy as jnp
from jax.experimental import pallas as pl
from jax.experimental.pallas import tpu as pltpu


# ----------------------------------------------------------------------------
# Kernels
# ----------------------------------------------------------------------------
def _backbone_head_kernel(x_ref, wb_ref, bb_ref, wh_ref, bh_ref,
                          feat_ref, logit_ref):
    # feat = relu(x @ Wb + bb)  -> MXU + VPU only.
    feat = jnp.dot(x_ref[...], wb_ref[...],
                   preferred_element_type=jnp.float32) + bb_ref[...]
    feat = jnp.maximum(feat, 0.0)
    feat_ref[...] = feat.astype(feat_ref.dtype)
    # logits = feat @ Wh + bh, computed while feat is still resident in VMEM.
    logit_ref[...] = (jnp.dot(feat, wh_ref[...],
                              preferred_element_type=jnp.float32)
                      + bh_ref[...]).astype(logit_ref.dtype)


def _backbone_only_kernel(x_ref, wb_ref, bb_ref, feat_ref):
    feat = jnp.dot(x_ref[...], wb_ref[...],
                   preferred_element_type=jnp.float32) + bb_ref[...]
    feat_ref[...] = jnp.maximum(feat, 0.0).astype(feat_ref.dtype)


# ----------------------------------------------------------------------------
# Wrappers
# ----------------------------------------------------------------------------
def _choose_tm(m, max_tm=512):
    """Largest row tile <= max_tm that divides m and is a multiple of 8,
    or the full extent when m is not 8-aligned (legal: block == array dim)."""
    if m % 8 != 0:
        return m
    tm = min(max_tm, m)
    tm -= tm % 8
    while m % tm != 0:
        tm -= 8
    return max(tm, 8)


def _fused_forward(x2, wb, bb, wh, bh):
    """x2: (M, Kin) lane-dense slab -> (feat (M, F), logits (M, K))."""
    m, kin = x2.shape
    f = wb.shape[1]
    k = wh.shape[1]
    tm = _choose_tm(m)
    grid = (m // tm,)

    feat, logits = pl.pallas_call(
        _backbone_head_kernel,
        out_shape=(jax.ShapeDtypeStruct((m, f), x2.dtype),
                   jax.ShapeDtypeStruct((m, k), x2.dtype)),
        grid_spec=pltpu.PrefetchScalarGridSpec(
            num_scalar_prefetch=0,
            grid=grid,
            in_specs=[
                pl.BlockSpec((tm, kin), lambda i: (i, 0)),   # x rows
                pl.BlockSpec((kin, f), lambda i: (0, 0)),    # Wb (resident)
                pl.BlockSpec((1, f), lambda i: (0, 0)),      # bb (resident)
                pl.BlockSpec((f, k), lambda i: (0, 0)),      # Wh (resident)
                pl.BlockSpec((1, k), lambda i: (0, 0)),      # bh (resident)
            ],
            out_specs=[
                pl.BlockSpec((tm, f), lambda i: (i, 0)),     # feat
                pl.BlockSpec((tm, k), lambda i: (i, 0)),     # logits
            ],
        ),
        compiler_params=pltpu.CompilerParams(
            dimension_semantics=("parallel",)),
    )(x2, wb, bb, wh, bh)
    return feat, logits


def _backbone_forward(x2, wb, bb):
    m, kin = x2.shape
    f = wb.shape[1]
    tm = _choose_tm(m)
    grid = (m // tm,)
    return pl.pallas_call(
        _backbone_only_kernel,
        out_shape=jax.ShapeDtypeStruct((m, f), x2.dtype),
        grid_spec=pltpu.PrefetchScalarGridSpec(
            num_scalar_prefetch=0,
            grid=grid,
            in_specs=[
                pl.BlockSpec((tm, kin), lambda i: (i, 0)),
                pl.BlockSpec((kin, f), lambda i: (0, 0)),
                pl.BlockSpec((1, f), lambda i: (0, 0)),
            ],
            out_specs=pl.BlockSpec((tm, f), lambda i: (i, 0)),
        ),
        compiler_params=pltpu.CompilerParams(
            dimension_semantics=("parallel",)),
    )(x2, wb, bb)


def multi_input_indep_joiner(input_list, backbone_params, head_params=None,
                             input_name='input', cond=(), postfix=''):
    """JAX/Pallas equivalent of MultiInputIndepJoiner.forward.

    backbone_params = (Wb (Kin, F), bb (1, F))  -> feat = relu(x_flat @ Wb + bb)
    head_params     = (Wh (F, K),  bh (1, K))   -> head(feat) = {'logits': feat @ Wh + bh}
    """
    xs = [x[input_name] for x in input_list]
    if len(cond) > 0:
        # torch.concat([x[input_name], cond[i]], dim=1) -> channel concat.
        xs = [jnp.concatenate([x, c], axis=1) for x, c in zip(xs, cond)]

    n = len(xs)
    stacked = jnp.stack(xs, axis=0)          # (N, B, C, H, W)
    b = stacked.shape[1]
    x2 = stacked.reshape(n * b, -1)          # lane-dense (N*B, Kin) slab

    wb, bb = backbone_params
    logits = None
    if head_params is not None:
        wh, bh = head_params
        feat2, logits2 = _fused_forward(x2, wb, bb, wh, bh)
        logits = logits2.reshape(n, b, -1)
    else:
        feat2 = _backbone_forward(x2, wb, bb)
    feat = feat2.reshape(n, b, -1)

    outs = []
    for i in range(n):
        out = {'feat' + postfix: feat[i]}
        if logits is not None:
            out['logits'] = logits[i]        # head(feat) output dict
        outs.append(out)
    # Second return value: the raw (pre-cond) inputs, unchanged.
    return outs, [x[input_name] for x in input_list]


# ----------------------------------------------------------------------------
# Demo / self-test
# ----------------------------------------------------------------------------
if __name__ == "__main__":
    key = jax.random.PRNGKey(0)
    kx0, kx1, kwb, kbb, kwh, kbh = jax.random.split(key, 6)

    B, C, H, W = 2, 4, 16, 16
    KIN = C * H * W        # 1024 (lane-aligned)
    FEAT = 256             # backbone feature width (multiple of 128)
    NCLS = 128             # head output width (multiple of 128)

    input_list = [
        {'input': jax.random.normal(kx0, (B, C, H, W), dtype=jnp.float32)},
        {'input': jax.random.normal(kx1, (B, C, H, W), dtype=jnp.float32)},
    ]

    backbone_params = (0.02 * jax.random.normal(kwb, (KIN, FEAT), jnp.float32),
                       0.02 * jax.random.normal(kbb, (1, FEAT), jnp.float32))
    head_params = (0.05 * jax.random.normal(kwh, (FEAT, NCLS), jnp.float32),
                   0.05 * jax.random.normal(kbh, (1, NCLS), jnp.float32))

    outs, raw_inputs = multi_input_indep_joiner(
        input_list, backbone_params, head_params, postfix='')

    for o in outs:
        jax.block_until_ready(o['feat'])
        jax.block_until_ready(o['logits'])

    # Pure-JAX reference (per-input, matching the PyTorch loop semantics).
    wb, bb = backbone_params
    wh, bh = head_params
    ok = True
    for o, inp in zip(outs, input_list):
        x2 = inp['input'].reshape(B, KIN)
        feat_ref = jnp.maximum(
            jnp.dot(x2, wb, preferred_element_type=jnp.float32) + bb, 0.0)
        logit_ref = jnp.dot(feat_ref, wh,
                            preferred_element_type=jnp.float32) + bh
        ok &= bool(jnp.allclose(o['feat'], feat_ref, atol=1e-2, rtol=1e-2))
        ok &= bool(jnp.allclose(o['logits'], logit_ref, atol=1e-2, rtol=1e-2))
    # Second return value must be exactly the raw inputs.
    for r, inp in zip(raw_inputs, input_list):
        ok &= bool(jnp.array_equal(r, inp['input']))

    print("KERNEL_OK" if ok else "KERNEL_MISMATCH")
</pallas_src>

<mosaic_0001>
module attributes {stable_mosaic.version = 11 : i64} {
  func.func @_backbone_head_kernel(%arg0: i32, %arg1: memref<4x1024xf32, #tpu.memory_space<vmem>>, %arg2: memref<1024x256xf32, #tpu.memory_space<vmem>>, %arg3: memref<1x256xf32, #tpu.memory_space<vmem>>, %arg4: memref<256x128xf32, #tpu.memory_space<vmem>>, %arg5: memref<1x128xf32, #tpu.memory_space<vmem>>, %arg6: memref<4x256xf32, #tpu.memory_space<vmem>>, %arg7: memref<4x128xf32, #tpu.memory_space<vmem>>) attributes {dimension_semantics = [#tpu.dimension_semantics<parallel>], iteration_bounds = array<i64: 1>, scalar_prefetch = 0 : i64, scratch_operands = 0 : i64, tpu.core_type = #tpu.core_type<tc>, window_params = [{transform_indices = @transform_0, window_bounds = array<i64: 4, 1024>}, {pipeline_mode = #tpu.pipeline_mode<synchronous>, transform_indices = @transform_1, window_bounds = array<i64: 1024, 256>}, {pipeline_mode = #tpu.pipeline_mode<synchronous>, transform_indices = @transform_2, window_bounds = array<i64: 1, 256>}, {pipeline_mode = #tpu.pipeline_mode<synchronous>, transform_indices = @transform_3, window_bounds = array<i64: 256, 128>}, {pipeline_mode = #tpu.pipeline_mode<synchronous>, transform_indices = @transform_4, window_bounds = array<i64: 1, 128>}, {transform_indices = @transform_5, window_bounds = array<i64: 4, 256>}, {transform_indices = @transform_6, window_bounds = array<i64: 4, 128>}]} {
    %c0 = arith.constant 0 : index
    %c0_0 = arith.constant 0 : index
    %0 = vector.load %arg1[%c0, %c0_0] : memref<4x1024xf32, #tpu.memory_space<vmem>>, vector<4x1024xf32>
    %c0_1 = arith.constant 0 : index
    %c0_2 = arith.constant 0 : index
    %1 = vector.load %arg2[%c0_1, %c0_2] : memref<1024x256xf32, #tpu.memory_space<vmem>>, vector<1024x256xf32>
    %cst = arith.constant dense<0.000000e+00> : vector<4x256xf32>
    %2 = tpu.matmul %0, %1, %cst {dimension_numbers = #tpu.dot_dimension_numbers<[1], [0], [0], [1], [0, 0, 1, 1], [], []>} : vector<4x1024xf32>, vector<1024x256xf32>, vector<4x256xf32> -> vector<4x256xf32>
    %c0_3 = arith.constant 0 : index
    %c0_4 = arith.constant 0 : index
    %3 = vector.load %arg3[%c0_3, %c0_4] : memref<1x256xf32, #tpu.memory_space<vmem>>, vector<1x256xf32>
    %4 = vector.broadcast %3 : vector<1x256xf32> to vector<4x256xf32>
    %5 = arith.addf %2, %4 : vector<4x256xf32>
    %cst_5 = arith.constant 0.000000e+00 : f32
    %6 = vector.broadcast %cst_5 : f32 to vector<4x256xf32>
    %7 = arith.maximumf %5, %6 : vector<4x256xf32>
    %c0_6 = arith.constant 0 : index
    %c0_7 = arith.constant 0 : index
    %8 = vector.load %arg6[%c0_6, %c0_7] : memref<4x256xf32, #tpu.memory_space<vmem>>, vector<4x256xf32>
    tpu.vector_store %arg6[%c0_6, %c0_7], %7 {strides = array<i32>} : memref<4x256xf32, #tpu.memory_space<vmem>>, vector<4x256xf32>,
    %c0_8 = arith.constant 0 : index
    %c0_9 = arith.constant 0 : index
    %9 = vector.load %arg4[%c0_8, %c0_9] : memref<256x128xf32, #tpu.memory_space<vmem>>, vector<256x128xf32>
    %cst_10 = arith.constant dense<0.000000e+00> : vector<4x128xf32>
    %10 = tpu.matmul %7, %9, %cst_10 {dimension_numbers = #tpu.dot_dimension_numbers<[1], [0], [0], [1], [0, 0, 1, 1], [], []>} : vector<4x256xf32>, vector<256x128xf32>, vector<4x128xf32> -> vector<4x128xf32>
    %c0_11 = arith.constant 0 : index
    %c0_12 = arith.constant 0 : index
    %11 = vector.load %arg5[%c0_11, %c0_12] : memref<1x128xf32, #tpu.memory_space<vmem>>, vector<1x128xf32>
    %12 = vector.broadcast %11 : vector<1x128xf32> to vector<4x128xf32>
    %13 = arith.addf %10, %12 : vector<4x128xf32>
    %c0_13 = arith.constant 0 : index
    %c0_14 = arith.constant 0 : index
    %14 = vector.load %arg7[%c0_13, %c0_14] : memref<4x128xf32, #tpu.memory_space<vmem>>, vector<4x128xf32>
    tpu.vector_store %arg7[%c0_13, %c0_14], %13 {strides = array<i32>} : memref<4x128xf32, #tpu.memory_space<vmem>>, vector<4x128xf32>,
    return
  }
  func.func @transform_0(%arg0: i32) -> (i32, i32) {
    %c0_i32 = arith.constant 0 : i32
    %c0_i32_0 = arith.constant 0 : i32
    return %arg0, %c0_i32 : i32, i32
  }
  func.func @transform_1(%arg0: i32) -> (i32, i32) {
    %c0_i32 = arith.constant 0 : i32
    %c0_i32_0 = arith.constant 0 : i32
    %c0_i32_1 = arith.constant 0 : i32
    return %c0_i32, %c0_i32_0 : i32, i32
  }
  func.func @transform_2(%arg0: i32) -> (i32, i32) {
    %c0_i32 = arith.constant 0 : i32
    %c0_i32_0 = arith.constant 0 : i32
    %c0_i32_1 = arith.constant 0 : i32
    return %c0_i32, %c0_i32_0 : i32, i32
  }
  func.func @transform_3(%arg0: i32) -> (i32, i32) {
    %c0_i32 = arith.constant 0 : i32
    %c0_i32_0 = arith.constant 0 : i32
    %c0_i32_1 = arith.constant 0 : i32
    return %c0_i32, %c0_i32_0 : i32, i32
  }
  func.func @transform_4(%arg0: i32) -> (i32, i32) {
    %c0_i32 = arith.constant 0 : i32
    %c0_i32_0 = arith.constant 0 : i32
    %c0_i32_1 = arith.constant 0 : i32
    return %c0_i32, %c0_i32_0 : i32, i32
  }
  func.func @transform_5(%arg0: i32) -> (i32, i32) {
    %c0_i32 = arith.constant 0 : i32
    %c0_i32_0 = arith.constant 0 : i32
    return %arg0, %c0_i32 : i32, i32
  }
  func.func @transform_6(%arg0: i32) -> (i32, i32) {
    %c0_i32 = arith.constant 0 : i32
    %c0_i32_0 = arith.constant 0 : i32
    return %arg0, %c0_i32 : i32, i32
  }
}

</mosaic_0001>

<bundles_post_ra>
// kernel: tpu_custom_call.1
= control target key start
LH: loop header
LB: loop body
LE: loop exit
PB: predicated region body
PF: predicated region fallthrough
CT: control target
= control target key end

     0   :  { %12 = vsyncpa [#allocation3], 0  ;;  %s1371_s0 = inlined_call_operand.hbm [shape: f32[4,1024], index: 0, kind: input, shape index: {}]   ;;  %s1372_s1 = inlined_call_operand.hbm [shape: f32[1024,256], index: 1, kind: input, shape index: {}]   ;;  %s1373_s2 = inlined_call_operand.vmem [shape: f32[1,256], index: 2, kind: input, shape index: {}]   ;;  %s1374_s3 = inlined_call_operand.hbm [shape: f32[256,128], index: 3, kind: input, shape index: {}]   ;;  %s1375_s4 = inlined_call_operand.vmem [shape: f32[1,128], index: 4, kind: input, shape index: {}]   ;;  %s1376_s5 = inlined_call_operand.hbm [shape: f32[4,256], index: 5, kind: output, shape index: {0}]   ;;  %s1377_s6 = inlined_call_operand.hbm [shape: f32[4,128], index: 6, kind: output, shape index: {1}]  }
   0x1   :  { %13 = vsyncpa [#allocation6], 0 }
   0x2   :  { %14 = vsyncpa [#allocation4], 0 }
   0x3   :  { %15 = vsyncpa [#allocation10], 0  ;;  %s1241_s21 = smov [#allocation5]   ;;  %s1123_s25 = scalar_lea.hbm %s1372_s1, 32768 }
   0x4   :  { %s31_s22 = sshll.u32 %s1241_s21, 4  ;;  %p1124_p0 = scmp.ne.s32.totalorder %s1372_s1, %s1123_s25  ;;  %s32_s22 = int_to_ptr.vmem [resolvable:$true] %s31_s22 }
   0x5   :  { %p1127_p1 = scmp.lt.u32.totalorder %s1123_s25, %s1372_s1 }
   0x7   :  { %p1129_p2 = pnand %p1127_p1, %p1124_p0 }
   0x9   :  { %1132 = shalt.err (!%p1129_p2)
}
   0xa   :  { %s1133_s30 = scalar_lea.vmem %s32_s22, 32768  ;;  %p1138_p4 = scmp.lt.s32.totalorder %s32_s22, %s32_s22 }
   0xb   :  { %p1134_p3 = scmp.ne.s32.totalorder %s32_s22, %s1133_s30  ;;  %p1139_p5 = scmp.lt.s32.totalorder %s1133_s30, %s1133_s30 }
   0xd   :  { %p1140_p6 = por %p1139_p5, %p1138_p4 }
   0xf   :  { %p1141_p7 = pnand %p1140_p6, %p1134_p3 }
  0x11   :  { %1144 = shalt.err (!%p1141_p7)
}
  0x12   :  { %s1242_s7 = smov 256   ;;  %s1243_s8 = smov 16  }
  0x13   :  { %37 = dma.hbm_to_vmem [thread:$0]  %s1372_s1, 32768, %s32_s22, [#allocation6], %s1242_s7, %s1242_s7, %s1243_s8  }
  0x14   :  { %s1244_s11 = smov [#allocation2]   ;;  %s1245_s13 = smov [#allocation7]  }
  0x15   :  { %s22_s12 = sshll.u32 %s1244_s11, 4  ;;  %s45_s14 = sshll.u32 %s1245_s13, 4  ;;  %s23_s12 = int_to_ptr.vmem [resolvable:$true] %s22_s12  ;;  %s46_s14 = int_to_ptr.vmem [resolvable:$true] %s45_s14 }
  0x16   :  { %s1145_s17 = scalar_lea.hbm %s1371_s0, 512 }
  0x17   :  { %p1146_p8 = scmp.ne.s32.totalorder %s1371_s0, %s1145_s17  ;;  %p1149_p9 = scmp.lt.u32.totalorder %s1145_s17, %s1371_s0 }
  0x19   :  { %p1151_p10 = pnand %p1149_p9, %p1146_p8 }
  0x1b   :  { %1154 = shalt.err (!%p1151_p10)
}
  0x1c   :  { %s1155_s1 = scalar_lea.vmem %s23_s12, 512  ;;  %p1160_p12 = scmp.lt.s32.totalorder %s23_s12, %s23_s12 }
  0x1d   :  { %p1156_p11 = scmp.ne.s32.totalorder %s23_s12, %s1155_s1  ;;  %p1161_p13 = scmp.lt.s32.totalorder %s1155_s1, %s1155_s1 }
  0x1f   :  { %p1162_p0 = por %p1161_p13, %p1160_p12 }
  0x21   :  { %p1163_p1 = pnand %p1162_p0, %p1156_p11 }
  0x23   :  { %1166 = shalt.err (!%p1163_p1)
}
  0x24   :  { %25 = dma.hbm_to_vmem [thread:$0]  %s1371_s0, 512, %s23_s12, [#allocation3]  }
  0x25   :  { %s1167_s26 = scalar_lea.hbm %s1374_s3, 4096 }
  0x26   :  { %p1168_p2 = scmp.ne.s32.totalorder %s1374_s3, %s1167_s26  ;;  %p1171_p3 = scmp.lt.u32.totalorder %s1167_s26, %s1374_s3 }
  0x28   :  { %p1173_p4 = pnand %p1171_p3, %p1168_p2 }
  0x2a   :  { %1176 = shalt.err (!%p1173_p4)
}
  0x2b   :  { %s1177_s7 = scalar_lea.vmem %s46_s14, 4096  ;;  %p1182_p6 = scmp.lt.s32.totalorder %s46_s14, %s46_s14 }
  0x2c   :  { %p1178_p5 = scmp.ne.s32.totalorder %s46_s14, %s1177_s7  ;;  %p1183_p7 = scmp.lt.s32.totalorder %s1177_s7, %s1177_s7 }
  0x2e   :  { %p1184_p8 = por %p1183_p7, %p1182_p6 }
  0x30   :  { %p1185_p9 = pnand %p1184_p8, %p1178_p5 }
  0x32   :  { %1188 = shalt.err (!%p1185_p9)
}
  0x33   :  { %s1246_s0 = smov 128   ;;  %s1247_s8 = smov 8  }
  0x34   :  { %51 = dma.hbm_to_vmem [thread:$0]  %s1374_s3, 4096, %s46_s14, [#allocation6], %s1246_s0, %s1246_s0, %s1247_s8  }
  0x35   :  { %1233 = dma.done.wait [#allocation3], 512  }
  0x36   :  { %1234 = vsyncadd [#allocation3], 4294966784 }
  0x37   :  { %1235 = dma.done.wait [#allocation6], 36864  }
  0x38   :  { %1236 = vsyncadd [#allocation6], 4294930432  ;;  %v68_v0 = vld [vmem:[#allocation5 + $0x8] sm:$0xff]  ;;  %v70_v1 = vld [vmem:[#allocation5 + $0x18] sm:$0xff]  ;;  %s1248_s12 = smov [#allocation8]  }
  0x39   :  { %v196_v2 = vld [vmem:[#allocation5 + $0x408] sm:$0xff]  ;;  %v814_v3 = vpack.c.bf16 %v70_v1, %v68_v0  ;;  %v198_v4 = vld [vmem:[#allocation5 + $0x418] sm:$0xff]  ;;  %v67_v5 = vld [vmem:[#allocation5] sm:$0xff]  ;;  %s754_s13 = sshll.u32 %s1248_s12, 4  ;;  %s755_s13 = int_to_ptr.vmem [resolvable:$true] %s754_s13 }
  0x3a   :  { %v69_v6 = vld [vmem:[#allocation5 + $0x10] sm:$0xff]  ;;  %v942_v7 = vpack.c.bf16 %v198_v4, %v196_v2  ;;  %v195_v9 = vld [vmem:[#allocation5 + $0x400] sm:$0xff]  ;;  %v72_v11 = vld [vmem:[#allocation5 + $0x28] sm:$0xff]  ;;  %p1194_p11 = scmp.lt.s32.totalorder %s755_s13, %s755_s13 }
  0x3b   :  { %v816_v8 = vpack.c.bf16 %v69_v6, %v67_v5  ;;  %v197_v10 = vld [vmem:[#allocation5 + $0x410] sm:$0xff]  ;;  %815 = vmatprep.subr.bf16.mxu1 %v814_v3  ;;  %v74_v13 = vld [vmem:[#allocation5 + $0x38] sm:$0xff]  ;;  %v200_v14 = vld [vmem:[#allocation5 + $0x428] sm:$0xff] }
  0x3c   :  { %v944_v12 = vpack.c.bf16 %v197_v10, %v195_v9  ;;  %v202_v15 = vld [vmem:[#allocation5 + $0x438] sm:$0xff]  ;;  %943 = vmatprep.subr.bf16.mxu0 %v942_v7  ;;  %v818_v16 = vpack.c.bf16 %v74_v13, %v72_v11  ;;  %v71_v18 = vld [vmem:[#allocation5 + $0x20] sm:$0xff]  ;;  %v73_v19 = vld [vmem:[#allocation5 + $0x30] sm:$0xff] }
  0x3d   :  { %817 = vmatpush1.bf16.msra.mxu1 %v816_v8  ;;  %v946_v17 = vpack.c.bf16 %v202_v15, %v200_v14  ;;  %v199_v20 = vld [vmem:[#allocation5 + $0x420] sm:$0xff]  ;;  %v820_v21 = vpack.c.bf16 %v73_v19, %v71_v18  ;;  %v201_v22 = vld [vmem:[#allocation5 + $0x430] sm:$0xff]  ;;  %v76_v23 = vld [vmem:[#allocation5 + $0x48] sm:$0xff] }
  0x3e   :  { %945 = vmatpush1.bf16.msra.mxu0 %v944_v12  ;;  %v78_v24 = vld [vmem:[#allocation5 + $0x58] sm:$0xff]  ;;  %819 = vmatprep.subr.bf16.mxu1 %v818_v16  ;;  %v948_v25 = vpack.c.bf16 %v201_v22, %v199_v20  ;;  %v204_v27 = vld [vmem:[#allocation5 + $0x448] sm:$0xff]  ;;  %v75_v29 = vld [vmem:[#allocation5 + $0x40] sm:$0xff] }
  0x3f   :  { %947 = vmatprep.subr.bf16.mxu0 %v946_v17  ;;  %v822_v26 = vpack.c.bf16 %v78_v24, %v76_v23  ;;  %v206_v28 = vld [vmem:[#allocation5 + $0x458] sm:$0xff]  ;;  %v77_v31 = vld [vmem:[#allocation5 + $0x50] sm:$0xff]  ;;  %v203_v32 = vld [vmem:[#allocation5 + $0x440] sm:$0xff] }
  0x40   :  { %v950_v30 = vpack.c.bf16 %v206_v28, %v204_v27  ;;  %v205_v33 = vld [vmem:[#allocation5 + $0x450] sm:$0xff]  ;;  %v824_v34 = vpack.c.bf16 %v77_v31, %v75_v29  ;;  %v80_v35 = vld [vmem:[#allocation5 + $0x68] sm:$0xff]  ;;  %v82_v36 = vld [vmem:[#allocation5 + $0x78] sm:$0xff] }
  0x41   :  { %821 = vmatpush1.bf16.msra.mxu1 %v820_v21  ;;  %v208_v37 = vld [vmem:[#allocation5 + $0x468] sm:$0xff]  ;;  %v952_v38 = vpack.c.bf16 %v205_v33, %v203_v32  ;;  %v826_v39 = vpack.c.bf16 %v82_v36, %v80_v35  ;;  %v210_v40 = vld [vmem:[#allocation5 + $0x478] sm:$0xff]  ;;  %v79_v41 = vld [vmem:[#allocation5 + $0x60] sm:$0xff] }
  0x42   :  { %949 = vmatpush1.bf16.msra.mxu0 %v948_v25  ;;  %823 = vmatprep.subr.bf16.mxu1 %v822_v26  ;;  %v81_v42 = vld [vmem:[#allocation5 + $0x70] sm:$0xff]  ;;  %v954_v43 = vpack.c.bf16 %v210_v40, %v208_v37  ;;  %v207_v44 = vld [vmem:[#allocation5 + $0x460] sm:$0xff]  ;;  %v84_v46 = vld [vmem:[#allocation5 + $0x88] sm:$0xff] }
  0x43   :  { %951 = vmatprep.subr.bf16.mxu0 %v950_v30  ;;  %v209_v45 = vld [vmem:[#allocation5 + $0x470] sm:$0xff]  ;;  %v86_v47 = vld [vmem:[#allocation5 + $0x98] sm:$0xff]  ;;  %v212_v48 = vld [vmem:[#allocation5 + $0x488] sm:$0xff]  ;;  %v828_v50 = vpack.c.bf16 %v81_v42, %v79_v41 }
  0x44   :  { %v214_v49 = vld [vmem:[#allocation5 + $0x498] sm:$0xff]  ;;  %v956_v51 = vpack.c.bf16 %v209_v45, %v207_v44  ;;  %v830_v52 = vpack.c.bf16 %v86_v47, %v84_v46  ;;  %v83_v53 = vld [vmem:[#allocation5 + $0x80] sm:$0xff]  ;;  %v85_v54 = vld [vmem:[#allocation5 + $0x90] sm:$0xff] }
  0x45   :  { %825 = vmatpush1.bf16.msra.mxu1 %v824_v34  ;;  %v211_v55 = vld [vmem:[#allocation5 + $0x480] sm:$0xff]  ;;  %v958_v56 = vpack.c.bf16 %v214_v49, %v212_v48  ;;  %v213_v57 = vld [vmem:[#allocation5 + $0x490] sm:$0xff]  ;;  %v88_v58 = vld [vmem:[#allocation5 + $0xa8] sm:$0xff]  ;;  %v832_v62 = vpack.c.bf16 %v85_v54, %v83_v53 }
  0x46   :  { %953 = vmatpush1.bf16.msra.mxu0 %v952_v38  ;;  %827 = vmatprep.subr.bf16.mxu1 %v826_v39  ;;  %v90_v59 = vld [vmem:[#allocation5 + $0xb8] sm:$0xff]  ;;  %v216_v60 = vld [vmem:[#allocation5 + $0x4a8] sm:$0xff]  ;;  %v960_v63 = vpack.c.bf16 %v213_v57, %v211_v55  ;;  %v87_v1 = vld [vmem:[#allocation5 + $0xa0] sm:$0xff] }
  0x47   :  { %955 = vmatprep.subr.bf16.mxu0 %v954_v43  ;;  %v218_v61 = vld [vmem:[#allocation5 + $0x4b8] sm:$0xff]  ;;  %v834_v0 = vpack.c.bf16 %v90_v59, %v88_v58  ;;  %v89_v2 = vld [vmem:[#allocation5 + $0xb0] sm:$0xff]  ;;  %v215_v3 = vld [vmem:[#allocation5 + $0x4a0] sm:$0xff] }
  0x48   :  { %v962_v4 = vpack.c.bf16 %v218_v61, %v216_v60  ;;  %v217_v5 = vld [vmem:[#allocation5 + $0x4b0] sm:$0xff]  ;;  %v92_v6 = vld [vmem:[#allocation5 + $0xc8] sm:$0xff]  ;;  %v94_v7 = vld [vmem:[#allocation5 + $0xd8] sm:$0xff]  ;;  %v836_v10 = vpack.c.bf16 %v89_v2, %v87_v1 }
  0x49   :  { %829 = vmatpush1.bf16.msra.mxu1 %v828_v50  ;;  %v220_v8 = vld [vmem:[#allocation5 + $0x4c8] sm:$0xff]  ;;  %v222_v9 = vld [vmem:[#allocation5 + $0x4d8] sm:$0xff]  ;;  %v964_v11 = vpack.c.bf16 %v217_v5, %v215_v3  ;;  %v838_v12 = vpack.c.bf16 %v94_v7, %v92_v6  ;;  %v91_v13 = vld [vmem:[#allocation5 + $0xc0] sm:$0xff] }
  0x4a   :  { %957 = vmatpush1.bf16.msra.mxu0 %v956_v51  ;;  %831 = vmatprep.subr.bf16.mxu1 %v830_v52  ;;  %v93_v14 = vld [vmem:[#allocation5 + $0xd0] sm:$0xff]  ;;  %v219_v15 = vld [vmem:[#allocation5 + $0x4c0] sm:$0xff]  ;;  %v966_v16 = vpack.c.bf16 %v222_v9, %v220_v8  ;;  %v96_v18 = vld [vmem:[#allocation5 + $0xe8] sm:$0xff] }
  0x4b   :  { %959 = vmatprep.subr.bf16.mxu0 %v958_v56  ;;  %v221_v17 = vld [vmem:[#allocation5 + $0x4d0] sm:$0xff]  ;;  %v98_v19 = vld [vmem:[#allocation5 + $0xf8] sm:$0xff]  ;;  %v224_v20 = vld [vmem:[#allocation5 + $0x4e8] sm:$0xff]  ;;  %v840_v22 = vpack.c.bf16 %v93_v14, %v91_v13 }
  0x4c   :  { %v226_v21 = vld [vmem:[#allocation5 + $0x4f8] sm:$0xff]  ;;  %v968_v23 = vpack.c.bf16 %v221_v17, %v219_v15  ;;  %v842_v24 = vpack.c.bf16 %v98_v19, %v96_v18  ;;  %v95_v25 = vld [vmem:[#allocation5 + $0xe0] sm:$0xff]  ;;  %v97_v26 = vld [vmem:[#allocation5 + $0xf0] sm:$0xff] }
  0x4d   :  { %833 = vmatpush1.bf16.msra.mxu1 %v832_v62  ;;  %v223_v27 = vld [vmem:[#allocation5 + $0x4e0] sm:$0xff]  ;;  %v970_v28 = vpack.c.bf16 %v226_v21, %v224_v20  ;;  %v225_v29 = vld [vmem:[#allocation5 + $0x4f0] sm:$0xff]  ;;  %v100_v30 = vld [vmem:[#allocation5 + $0x108] sm:$0xff]  ;;  %v844_v34 = vpack.c.bf16 %v97_v26, %v95_v25 }
  0x4e   :  { %961 = vmatpush1.bf16.msra.mxu0 %v960_v63  ;;  %835 = vmatprep.subr.bf16.mxu1 %v834_v0  ;;  %v102_v31 = vld [vmem:[#allocation5 + $0x118] sm:$0xff]  ;;  %v228_v32 = vld [vmem:[#allocation5 + $0x508] sm:$0xff]  ;;  %v972_v35 = vpack.c.bf16 %v225_v29, %v223_v27  ;;  %v99_v37 = vld [vmem:[#allocation5 + $0x100] sm:$0xff] }
  0x4f   :  { %963 = vmatprep.subr.bf16.mxu0 %v962_v4  ;;  %v230_v33 = vld [vmem:[#allocation5 + $0x518] sm:$0xff]  ;;  %v846_v36 = vpack.c.bf16 %v102_v31, %v100_v30  ;;  %v101_v38 = vld [vmem:[#allocation5 + $0x110] sm:$0xff]  ;;  %v227_v39 = vld [vmem:[#allocation5 + $0x500] sm:$0xff] }
  0x50   :  { %v974_v40 = vpack.c.bf16 %v230_v33, %v228_v32  ;;  %v229_v41 = vld [vmem:[#allocation5 + $0x510] sm:$0xff]  ;;  %v104_v42 = vld [vmem:[#allocation5 + $0x128] sm:$0xff]  ;;  %v106_v43 = vld [vmem:[#allocation5 + $0x138] sm:$0xff]  ;;  %v848_v46 = vpack.c.bf16 %v101_v38, %v99_v37 }
  0x51   :  { %837 = vmatpush1.bf16.msra.mxu1 %v836_v10  ;;  %v232_v44 = vld [vmem:[#allocation5 + $0x528] sm:$0xff]  ;;  %v234_v45 = vld [vmem:[#allocation5 + $0x538] sm:$0xff]  ;;  %v976_v47 = vpack.c.bf16 %v229_v41, %v227_v39  ;;  %v850_v48 = vpack.c.bf16 %v106_v43, %v104_v42  ;;  %v103_v49 = vld [vmem:[#allocation5 + $0x120] sm:$0xff] }
  0x52   :  { %965 = vmatpush1.bf16.msra.mxu0 %v964_v11  ;;  %839 = vmatprep.subr.bf16.mxu1 %v838_v12  ;;  %v105_v50 = vld [vmem:[#allocation5 + $0x130] sm:$0xff]  ;;  %v231_v51 = vld [vmem:[#allocation5 + $0x520] sm:$0xff]  ;;  %v978_v52 = vpack.c.bf16 %v234_v45, %v232_v44  ;;  %v108_v54 = vld [vmem:[#allocation5 + $0x148] sm:$0xff] }
  0x53   :  { %967 = vmatprep.subr.bf16.mxu0 %v966_v16  ;;  %v233_v53 = vld [vmem:[#allocation5 + $0x530] sm:$0xff]  ;;  %v110_v55 = vld [vmem:[#allocation5 + $0x158] sm:$0xff]  ;;  %v236_v56 = vld [vmem:[#allocation5 + $0x548] sm:$0xff]  ;;  %v852_v58 = vpack.c.bf16 %v105_v50, %v103_v49 }
  0x54   :  { %v238_v57 = vld [vmem:[#allocation5 + $0x558] sm:$0xff]  ;;  %v980_v59 = vpack.c.bf16 %v233_v53, %v231_v51  ;;  %v854_v60 = vpack.c.bf16 %v110_v55, %v108_v54  ;;  %v107_v61 = vld [vmem:[#allocation5 + $0x140] sm:$0xff]  ;;  %v109_v62 = vld [vmem:[#allocation5 + $0x150] sm:$0xff] }
  0x55   :  { %841 = vmatpush1.bf16.msra.mxu1 %v840_v22  ;;  %v235_v63 = vld [vmem:[#allocation5 + $0x540] sm:$0xff]  ;;  %v982_v0 = vpack.c.bf16 %v238_v57, %v236_v56  ;;  %v237_v1 = vld [vmem:[#allocation5 + $0x550] sm:$0xff]  ;;  %v112_v2 = vld [vmem:[#allocation5 + $0x168] sm:$0xff]  ;;  %v856_v6 = vpack.c.bf16 %v109_v62, %v107_v61 }
  0x56   :  { %969 = vmatpush1.bf16.msra.mxu0 %v968_v23  ;;  %843 = vmatprep.subr.bf16.mxu1 %v842_v24  ;;  %v114_v3 = vld [vmem:[#allocation5 + $0x178] sm:$0xff]  ;;  %v240_v4 = vld [vmem:[#allocation5 + $0x568] sm:$0xff]  ;;  %v111_v7 = vld [vmem:[#allocation5 + $0x160] sm:$0xff]  ;;  %v984_v8 = vpack.c.bf16 %v237_v1, %v235_v63 }
  0x57   :  { %971 = vmatprep.subr.bf16.mxu0 %v970_v28  ;;  %v242_v5 = vld [vmem:[#allocation5 + $0x578] sm:$0xff]  ;;  %v858_v9 = vpack.c.bf16 %v114_v3, %v112_v2  ;;  %v113_v10 = vld [vmem:[#allocation5 + $0x170] sm:$0xff]  ;;  %v239_v11 = vld [vmem:[#allocation5 + $0x560] sm:$0xff] }
  0x58   :  { %v241_v12 = vld [vmem:[#allocation5 + $0x570] sm:$0xff]  ;;  %v986_v13 = vpack.c.bf16 %v242_v5, %v240_v4  ;;  %v116_v14 = vld [vmem:[#allocation5 + $0x188] sm:$0xff]  ;;  %v118_v15 = vld [vmem:[#allocation5 + $0x198] sm:$0xff]  ;;  %v860_v21 = vpack.c.bf16 %v113_v10, %v111_v7 }
  0x59   :  { %845 = vmatpush1.bf16.msra.mxu1 %v844_v34  ;;  %v1321_v16 = vld [vmem:[#allocation2] sm:$0xff]  ;;  %v244_v17 = vld [vmem:[#allocation5 + $0x588] sm:$0xff]  ;;  %v246_v18 = vld [vmem:[#allocation5 + $0x598] sm:$0xff]  ;;  %v988_v23 = vpack.c.bf16 %v241_v12, %v239_v11  ;;  %v862_v24 = vpack.c.bf16 %v118_v15, %v116_v14 }
  0x5a   :  { %973 = vmatpush1.bf16.msra.mxu0 %v972_v35  ;;  %847 = vmatprep.subr.bf16.mxu1 %v846_v36  ;;  %v339_v19 = vcombine.high %v1321_v16, %v1321_v16  ;;  %v1325_v20 = vld [vmem:[#allocation2 + $0x10] sm:$0xff]  ;;  %v115_v25 = vld [vmem:[#allocation5 + $0x180] sm:$0xff]  ;;  %v990_v28 = vpack.c.bf16 %v246_v18, %v244_v17  ;;  %v120_v30 = vld [vmem:[#allocation5 + $0x1a8] sm:$0xff] }
  0x5b   :  { %975 = vmatprep.subr.bf16.mxu0 %v974_v40  ;;  %v341_v22 = vcombine.high %v1325_v20, %v1325_v20  ;;  %v117_v26 = vld [vmem:[#allocation5 + $0x190] sm:$0xff]  ;;  %v243_v27 = vld [vmem:[#allocation5 + $0x580] sm:$0xff]  ;;  %v122_v31 = vld [vmem:[#allocation5 + $0x1b8] sm:$0xff] }
  0x5c   :  { %v245_v29 = vld [vmem:[#allocation5 + $0x590] sm:$0xff]  ;;  %411 = vmatprep.mubr.f32.mxu1 %v339_v19  ;;  %v248_v32 = vld [vmem:[#allocation5 + $0x5a8] sm:$0xff]  ;;  %v250_v33 = vld [vmem:[#allocation5 + $0x5b8] sm:$0xff]  ;;  %v864_v34 = vpack.c.bf16 %v117_v26, %v115_v25  ;;  %v866_v36 = vpack.c.bf16 %v122_v31, %v120_v30 }
  0x5d   :  { %849 = vmatpush1.bf16.msra.mxu1 %v848_v46  ;;  %553 = vmatprep.mubr.f32.mxu0 %v341_v22  ;;  %v992_v35 = vpack.c.bf16 %v245_v29, %v243_v27  ;;  %v119_v37 = vld [vmem:[#allocation5 + $0x1a0] sm:$0xff]  ;;  %v121_v38 = vld [vmem:[#allocation5 + $0x1b0] sm:$0xff]  ;;  %v994_v40 = vpack.c.bf16 %v250_v33, %v248_v32  ;;  %v124_v42 = vld [vmem:[#allocation5 + $0x1c8] sm:$0xff] }
  0x5e   :  { %977 = vmatpush1.bf16.msra.mxu0 %v976_v47  ;;  %851 = vmatprep.subr.bf16.mxu1 %v850_v48  ;;  %v247_v39 = vld [vmem:[#allocation5 + $0x5a0] sm:$0xff]  ;;  %v249_v41 = vld [vmem:[#allocation5 + $0x5b0] sm:$0xff]  ;;  %v126_v43 = vld [vmem:[#allocation5 + $0x1d8] sm:$0xff]  ;;  %v868_v46 = vpack.c.bf16 %v121_v38, %v119_v37 }
  0x5f   :  { %979 = vmatprep.subr.bf16.mxu0 %v978_v52  ;;  %v252_v44 = vld [vmem:[#allocation5 + $0x5c8] sm:$0xff]  ;;  %v254_v45 = vld [vmem:[#allocation5 + $0x5d8] sm:$0xff]  ;;  %v996_v47 = vpack.c.bf16 %v249_v41, %v247_v39  ;;  %v870_v48 = vpack.c.bf16 %v126_v43, %v124_v42  ;;  %v123_v49 = vld [vmem:[#allocation5 + $0x1c0] sm:$0xff] }
  0x60   :  { %v125_v50 = vld [vmem:[#allocation5 + $0x1d0] sm:$0xff]  ;;  %v251_v51 = vld [vmem:[#allocation5 + $0x5c0] sm:$0xff]  ;;  %v998_v52 = vpack.c.bf16 %v254_v45, %v252_v44  ;;  %v128_v54 = vld [vmem:[#allocation5 + $0x1e8] sm:$0xff] }
  0x61   :  { %853 = vmatpush1.bf16.msra.mxu1 %v852_v58  ;;  %v253_v53 = vld [vmem:[#allocation5 + $0x5d0] sm:$0xff]  ;;  %v130_v55 = vld [vmem:[#allocation5 + $0x1f8] sm:$0xff]  ;;  %v256_v56 = vld [vmem:[#allocation5 + $0x5e8] sm:$0xff]  ;;  %v872_v58 = vpack.c.bf16 %v125_v50, %v123_v49 }
  0x62   :  { %981 = vmatpush1.bf16.msra.mxu0 %v980_v59  ;;  %855 = vmatprep.subr.bf16.mxu1 %v854_v60  ;;  %v258_v57 = vld [vmem:[#allocation5 + $0x5f8] sm:$0xff]  ;;  %v1000_v59 = vpack.c.bf16 %v253_v53, %v251_v51  ;;  %v874_v60 = vpack.c.bf16 %v130_v55, %v128_v54  ;;  %v127_v61 = vld [vmem:[#allocation5 + $0x1e0] sm:$0xff]  ;;  %v129_v62 = vld [vmem:[#allocation5 + $0x1f0] sm:$0xff] }
  0x63   :  { %983 = vmatprep.subr.bf16.mxu0 %v982_v0  ;;  %v255_v63 = vld [vmem:[#allocation5 + $0x5e0] sm:$0xff]  ;;  %v1002_v0 = vpack.c.bf16 %v258_v57, %v256_v56  ;;  %v257_v1 = vld [vmem:[#allocation5 + $0x5f0] sm:$0xff]  ;;  %v132_v2 = vld [vmem:[#allocation5 + $0x208] sm:$0xff] }
  0x64   :  { %v134_v3 = vld [vmem:[#allocation5 + $0x218] sm:$0xff]  ;;  %v260_v4 = vld [vmem:[#allocation5 + $0x608] sm:$0xff]  ;;  %v1004_v7 = vpack.c.bf16 %v257_v1, %v255_v63  ;;  %v133_v10 = vld [vmem:[#allocation5 + $0x210] sm:$0xff] }
  0x65   :  { %857 = vmatpush1.bf16.msra.mxu1 %v856_v6  ;;  %v262_v5 = vld [vmem:[#allocation5 + $0x618] sm:$0xff]  ;;  %v876_v6 = vpack.c.bf16 %v129_v62, %v127_v61  ;;  %v259_v11 = vld [vmem:[#allocation5 + $0x600] sm:$0xff]  ;;  %v136_v14 = vld [vmem:[#allocation5 + $0x228] sm:$0xff] }
  0x66   :  { %985 = vmatpush1.bf16.msra.mxu0 %v984_v8  ;;  %859 = vmatprep.subr.bf16.mxu1 %v858_v9  ;;  %v878_v8 = vpack.c.bf16 %v134_v3, %v132_v2  ;;  %v131_v9 = vld [vmem:[#allocation5 + $0x200] sm:$0xff]  ;;  %v1006_v12 = vpack.c.bf16 %v262_v5, %v260_v4  ;;  %v138_v15 = vld [vmem:[#allocation5 + $0x238] sm:$0xff]  ;;  %v264_v17 = vld [vmem:[#allocation5 + $0x628] sm:$0xff] }
  0x67   :  { %987 = vmatprep.subr.bf16.mxu0 %v986_v13  ;;  %v261_v13 = vld [vmem:[#allocation5 + $0x610] sm:$0xff]  ;;  %v266_v18 = vld [vmem:[#allocation5 + $0x638] sm:$0xff]  ;;  %v880_v19 = vpack.c.bf16 %v133_v10, %v131_v9  ;;  %v882_v22 = vpack.c.bf16 %v138_v15, %v136_v14  ;;  %v263_v25 = vld [vmem:[#allocation5 + $0x620] sm:$0xff] }
  0x68   :  { %v1010_v26 = vpack.c.bf16 %v266_v18, %v264_v17  ;;  %v265_v27 = vld [vmem:[#allocation5 + $0x630] sm:$0xff]  ;;  %v142_v29 = vld [vmem:[#allocation5 + $0x258] sm:$0xff]  ;;  %v268_v30 = vld [vmem:[#allocation5 + $0x648] sm:$0xff] }
  0x69   :  { %861 = vmatpush1.bf16.msra.mxu1 %v860_v21  ;;  %v1008_v21 = vpack.c.bf16 %v261_v13, %v259_v11  ;;  %v270_v31 = vld [vmem:[#allocation5 + $0x658] sm:$0xff]  ;;  %v1012_v33 = vpack.c.bf16 %v265_v27, %v263_v25  ;;  %v267_v37 = vld [vmem:[#allocation5 + $0x640] sm:$0xff]  ;;  %v269_v39 = vld [vmem:[#allocation5 + $0x650] sm:$0xff] }
  0x6a   :  { %989 = vmatpush1.bf16.msra.mxu0 %v988_v23  ;;  %863 = vmatprep.subr.bf16.mxu1 %v862_v24  ;;  %v135_v23 = vld [vmem:[#allocation5 + $0x220] sm:$0xff]  ;;  %v137_v24 = vld [vmem:[#allocation5 + $0x230] sm:$0xff]  ;;  %v1014_v38 = vpack.c.bf16 %v270_v31, %v268_v30  ;;  %v146_v41 = vld [vmem:[#allocation5 + $0x278] sm:$0xff] }
  0x6b   :  { %991 = vmatprep.subr.bf16.mxu0 %v990_v28  ;;  %v140_v28 = vld [vmem:[#allocation5 + $0x248] sm:$0xff]  ;;  %v884_v32 = vpack.c.bf16 %v137_v24, %v135_v23  ;;  %v143_v45 = vld [vmem:[#allocation5 + $0x260] sm:$0xff]  ;;  %v273_v49 = vld [vmem:[#allocation5 + $0x670] sm:$0xff] }
  0x6c   :  { %v272_v42 = vld [vmem:[#allocation5 + $0x668] sm:$0xff]  ;;  %v150_v51 = vld [vmem:[#allocation5 + $0x298] sm:$0xff]  ;;  %v147_v57 = vld [vmem:[#allocation5 + $0x280] sm:$0xff] }
  0x6d   :  { %865 = vmatpush1.bf16.msra.mxu1 %v864_v34  ;;  %v886_v34 = vpack.c.bf16 %v142_v29, %v140_v28  ;;  %v148_v50 = vld [vmem:[#allocation5 + $0x288] sm:$0xff]  ;;  %v278_v53 = vld [vmem:[#allocation5 + $0x698] sm:$0xff]  ;;  %v277_v61 = vld [vmem:[#allocation5 + $0x690] sm:$0xff] }
  0x6e   :  { %993 = vmatpush1.bf16.msra.mxu0 %v992_v35  ;;  %867 = vmatprep.subr.bf16.mxu1 %v866_v36  ;;  %v139_v35 = vld [vmem:[#allocation5 + $0x240] sm:$0xff]  ;;  %v141_v36 = vld [vmem:[#allocation5 + $0x250] sm:$0xff]  ;;  %v894_v56 = vpack.c.bf16 %v150_v51, %v148_v50  ;;  %v152_v62 = vld [vmem:[#allocation5 + $0x2a8] sm:$0xff] }
  0x6f   :  { %995 = vmatprep.subr.bf16.mxu0 %v994_v40  ;;  %v144_v40 = vld [vmem:[#allocation5 + $0x268] sm:$0xff]  ;;  %v888_v43 = vpack.c.bf16 %v141_v36, %v139_v35  ;;  %v154_v63 = vld [vmem:[#allocation5 + $0x2b8] sm:$0xff]  ;;  %v151_v5 = vld [vmem:[#allocation5 + $0x2a0] sm:$0xff] }
  0x70   :  { %v890_v44 = vpack.c.bf16 %v146_v41, %v144_v40  ;;  %v282_v1 = vld [vmem:[#allocation5 + $0x6b8] sm:$0xff]  ;;  %v898_v4 = vpack.c.bf16 %v154_v63, %v152_v62  ;;  %v281_v9 = vld [vmem:[#allocation5 + $0x6b0] sm:$0xff]  ;;  %v156_v10 = vld [vmem:[#allocation5 + $0x2c8] sm:$0xff] }
  0x71   :  { %869 = vmatpush1.bf16.msra.mxu1 %v868_v46  ;;  %v145_v46 = vld [vmem:[#allocation5 + $0x270] sm:$0xff]  ;;  %v158_v11 = vld [vmem:[#allocation5 + $0x2d8] sm:$0xff]  ;;  %v155_v15 = vld [vmem:[#allocation5 + $0x2c0] sm:$0xff] }
  0x72   :  { %997 = vmatpush1.bf16.msra.mxu0 %v996_v47  ;;  %871 = vmatprep.subr.bf16.mxu1 %v870_v48  ;;  %v271_v47 = vld [vmem:[#allocation5 + $0x660] sm:$0xff]  ;;  %v892_v54 = vpack.c.bf16 %v145_v46, %v143_v45  ;;  %v286_v13 = vld [vmem:[#allocation5 + $0x6d8] sm:$0xff]  ;;  %v157_v17 = vld [vmem:[#allocation5 + $0x2d0] sm:$0xff] }
  0x73   :  { %999 = vmatprep.subr.bf16.mxu0 %v998_v52  ;;  %v276_v52 = vld [vmem:[#allocation5 + $0x688] sm:$0xff]  ;;  %v1020_v55 = vpack.c.bf16 %v273_v49, %v271_v47  ;;  %v162_v25 = vld [vmem:[#allocation5 + $0x2f8] sm:$0xff]  ;;  %v159_v35 = vld [vmem:[#allocation5 + $0x2e0] sm:$0xff] }
  0x74   :  { %v160_v23 = vld [vmem:[#allocation5 + $0x2e8] sm:$0xff]  ;;  %v1333_v27 = vld [vmem:[#allocation2 + $0x18] sm:$0xff]  ;;  %v161_v36 = vld [vmem:[#allocation5 + $0x2f0] sm:$0xff] }
  0x75   :  { %873 = vmatpush1.bf16.msra.mxu1 %v872_v58  ;;  %v149_v58 = vld [vmem:[#allocation5 + $0x290] sm:$0xff]  ;;  %v288_v28 = vld [vmem:[#allocation5 + $0x6e8] sm:$0xff]  ;;  %v290_v29 = vld [vmem:[#allocation5 + $0x6f8] sm:$0xff]  ;;  %v342_v31 = vcombine.high %v1333_v27, %v1333_v27 }
  0x76   :  { %1001 = vmatpush1.bf16.msra.mxu0 %v1000_v59  ;;  %875 = vmatprep.subr.bf16.mxu1 %v874_v60  ;;  %v275_v59 = vld [vmem:[#allocation5 + $0x680] sm:$0xff]  ;;  %v1022_v60 = vpack.c.bf16 %v278_v53, %v276_v52  ;;  %v896_v2 = vpack.c.bf16 %v149_v58, %v147_v57  ;;  %v164_v40 = vld [vmem:[#allocation5 + $0x308] sm:$0xff]  ;;  %v166_v41 = vld [vmem:[#allocation5 + $0x318] sm:$0xff] }
  0x77   :  { %1003 = vmatprep.subr.bf16.mxu0 %v1002_v0  ;;  %v280_v0 = vld [vmem:[#allocation5 + $0x6a8] sm:$0xff]  ;;  %v1024_v3 = vpack.c.bf16 %v277_v61, %v275_v59  ;;  %v163_v45 = vld [vmem:[#allocation5 + $0x300] sm:$0xff]  ;;  %v165_v46 = vld [vmem:[#allocation5 + $0x310] sm:$0xff] }
  0x78   :  { %v291_v47 = vld [vmem:[#allocation5 + $0x700] sm:$0xff]  ;;  %v293_v49 = vld [vmem:[#allocation5 + $0x710] sm:$0xff]  ;;  %v168_v50 = vld [vmem:[#allocation5 + $0x328] sm:$0xff] }
  0x79   :  { %877 = vmatpush1.bf16.msra.mxu1 %v876_v6  ;;  %v153_v6 = vld [vmem:[#allocation5 + $0x2b0] sm:$0xff]  ;;  %v170_v51 = vld [vmem:[#allocation5 + $0x338] sm:$0xff]  ;;  %v296_v52 = vld [vmem:[#allocation5 + $0x728] sm:$0xff] }
  0x7a   :  { %1005 = vmatpush1.bf16.msra.mxu0 %v1004_v7  ;;  %879 = vmatprep.subr.bf16.mxu1 %v878_v8  ;;  %v279_v7 = vld [vmem:[#allocation5 + $0x6a0] sm:$0xff]  ;;  %v1026_v8 = vpack.c.bf16 %v282_v1, %v280_v0  ;;  %v900_v14 = vpack.c.bf16 %v153_v6, %v151_v5  ;;  %v298_v53 = vld [vmem:[#allocation5 + $0x738] sm:$0xff]  ;;  %v169_v58 = vld [vmem:[#allocation5 + $0x330] sm:$0xff] }
  0x7b   :  { %1007 = vmatprep.subr.bf16.mxu0 %v1006_v12  ;;  %v284_v12 = vld [vmem:[#allocation5 + $0x6c8] sm:$0xff]  ;;  %v1028_v18 = vpack.c.bf16 %v281_v9, %v279_v7  ;;  %v167_v57 = vld [vmem:[#allocation5 + $0x320] sm:$0xff]  ;;  %v297_v61 = vld [vmem:[#allocation5 + $0x730] sm:$0xff] }
  0x7c   :  { %412 = vmatmul.mubr.f32.vlgmr.msra.gmra.mrb[0].mxu1 %v1321_v16  ;;  %v274_v16 = vld [vmem:[#allocation5 + $0x678] sm:$0xff]  ;;  %v1030_v24 = vpack.c.bf16 %v286_v13, %v284_v12  ;;  %v295_v59 = vld [vmem:[#allocation5 + $0x720] sm:$0xff]  ;;  %v172_v62 = vld [vmem:[#allocation5 + $0x348] sm:$0xff] }
  0x7d   :  { %881 = vmatpush1.bf16.msra.mxu1 %v880_v19  ;;  %554 = vmatmul.mubr.f32.vlgmr.msra.gmra.mrb[0].mxu0 %v1325_v20  ;;  %v1016_v20 = vpack.c.bf16 %v269_v39, %v267_v37  ;;  %v1018_v48 = vpack.c.bf16 %v274_v16, %v272_v42  ;;  %v902_v19 = vpack.c.bf16 %v158_v11, %v156_v10  ;;  %v287_v37 = vld [vmem:[#allocation5 + $0x6e0] sm:$0xff]  ;;  %v289_v39 = vld [vmem:[#allocation5 + $0x6f0] sm:$0xff]  ;;  %v292_v42 = vld [vmem:[#allocation5 + $0x708] sm:$0xff] }
  0x7e   :  { %1009 = vmatpush1.bf16.msra.mxu0 %v1008_v21  ;;  %883 = vmatprep.subr.bf16.mxu1 %v882_v22  ;;  %v283_v21 = vld [vmem:[#allocation5 + $0x6c0] sm:$0xff]  ;;  %v285_v22 = vld [vmem:[#allocation5 + $0x6d0] sm:$0xff]  ;;  %v294_v16 = vld [vmem:[#allocation5 + $0x718] sm:$0xff] }
  0x7f   :  { %1011 = vmatprep.subr.bf16.mxu0 %v1010_v26  ;;  %v1331_v26 = vld [vmem:[#allocation2 + $0x8] sm:$0xff]  ;;  %624 = vmatprep.mubr.f32.mxu0 %v342_v31  ;;  %v174_v63 = vld [vmem:[#allocation5 + $0x358] sm:$0xff]  ;;  %v171_v5 = vld [vmem:[#allocation5 + $0x340] sm:$0xff] }
  0x80   :  { %v340_v30 = vcombine.high %v1331_v26, %v1331_v26  ;;  %v300_v0 = vld [vmem:[#allocation5 + $0x748] sm:$0xff]  ;;  %v302_v1 = vld [vmem:[#allocation5 + $0x758] sm:$0xff]  ;;  %v173_v6 = vld [vmem:[#allocation5 + $0x350] sm:$0xff] }
  0x81   :  { %885 = vmatpush1.bf16.msra.mxu1 %v884_v32  ;;  %v904_v32 = vpack.c.bf16 %v157_v17, %v155_v15  ;;  %v299_v7 = vld [vmem:[#allocation5 + $0x740] sm:$0xff]  ;;  %v301_v9 = vld [vmem:[#allocation5 + $0x750] sm:$0xff]  ;;  %v176_v10 = vld [vmem:[#allocation5 + $0x368] sm:$0xff] }
  0x82   :  { %1013 = vmatpush1.bf16.msra.mxu0 %v1012_v33  ;;  %887 = vmatprep.subr.bf16.mxu1 %v886_v34  ;;  %v1032_v33 = vpack.c.bf16 %v285_v22, %v283_v21  ;;  %v906_v34 = vpack.c.bf16 %v162_v25, %v160_v23  ;;  %v178_v11 = vld [vmem:[#allocation5 + $0x378] sm:$0xff]  ;;  %v304_v12 = vld [vmem:[#allocation5 + $0x768] sm:$0xff]  ;;  %v1048_v15 = vpack.c.bf16 %v301_v9, %v299_v7  ;;  %v303_v21 = vld [vmem:[#allocation5 + $0x760] sm:$0xff] }
  0x83   :  { %1015 = vmatprep.subr.bf16.mxu0 %v1014_v38  ;;  %v1034_v38 = vpack.c.bf16 %v290_v29, %v288_v28  ;;  %482 = vmatprep.mubr.f32.mxu1 %v340_v30  ;;  %v306_v13 = vld [vmem:[#allocation5 + $0x778] sm:$0xff]  ;;  %v922_v17 = vpack.c.bf16 %v178_v11, %v176_v10  ;;  %v305_v23 = vld [vmem:[#allocation5 + $0x770] sm:$0xff]  ;;  %v308_v28 = vld [vmem:[#allocation5 + $0x788] sm:$0xff] }
  0x84   :  { %v1050_v22 = vpack.c.bf16 %v306_v13, %v304_v12  ;;  %v182_v25 = vld [vmem:[#allocation5 + $0x398] sm:$0xff]  ;;  %v1052_v31 = vpack.c.bf16 %v305_v23, %v303_v21  ;;  %v321_v7 = vld [vmem:[#allocation5 + $0x7f0] sm:$0xff]  ;;  %v655_v9 = vld [vmem:[#allocation7 + $0x88] sm:$0xff] }
  0x85   :  { %889 = vmatpush1.bf16.msra.mxu1 %v888_v43  ;;  %v908_v43 = vpack.c.bf16 %v161_v36, %v159_v35  ;;  %v310_v29 = vld [vmem:[#allocation5 + $0x798] sm:$0xff]  ;;  %v307_v35 = vld [vmem:[#allocation5 + $0x780] sm:$0xff]  ;;  %v640_v21 = vld [vmem:[#allocation7 + $0x10] sm:$0xff] }
  0x86   :  { %1017 = vmatpush1.bf16.msra.mxu0 %v1016_v20  ;;  %891 = vmatprep.subr.bf16.mxu1 %v890_v44  ;;  %v1036_v20 = vpack.c.bf16 %v289_v39, %v287_v37  ;;  %v910_v44 = vpack.c.bf16 %v166_v41, %v164_v40  ;;  %v1054_v36 = vpack.c.bf16 %v310_v29, %v308_v28  ;;  %v309_v37 = vld [vmem:[#allocation5 + $0x790] sm:$0xff]  ;;  %v186_v39 = vld [vmem:[#allocation5 + $0x3b8] sm:$0xff]  ;;  %v312_v40 = vld [vmem:[#allocation5 + $0x7a8] sm:$0xff] }
  0x87   :  { %1019 = vmatprep.subr.bf16.mxu0 %v1018_v48  ;;  %v1038_v48 = vpack.c.bf16 %v294_v16, %v292_v42  ;;  %v314_v41 = vld [vmem:[#allocation5 + $0x7b8] sm:$0xff]  ;;  %v1056_v16 = vpack.c.bf16 %v309_v37, %v307_v35  ;;  %v638_v13 = vld [vmem:[#allocation7] sm:$0xff]  ;;  %v644_v35 = vld [vmem:[#allocation7 + $0x30] sm:$0xff] }
  0x88   :  { %v658_v23 = vld [vmem:[#allocation7 + $0xa0] sm:$0xff] }
  0x89   :  { %893 = vmatpush1.bf16.msra.mxu1 %v892_v54  ;;  %v912_v54 = vpack.c.bf16 %v165_v46, %v163_v45  ;;  %v311_v45 = vld [vmem:[#allocation5 + $0x7a0] sm:$0xff]  ;;  %v1058_v46 = vpack.c.bf16 %v314_v41, %v312_v40  ;;  %v647_v40 = vld [vmem:[#allocation7 + $0x48] sm:$0xff]  ;;  %v664_v41 = vld [vmem:[#allocation7 + $0xd0] sm:$0xff] }
  0x8a   :  { %1021 = vmatpush1.bf16.msra.mxu0 %v1020_v55  ;;  %895 = vmatprep.subr.bf16.mxu1 %v894_v56  ;;  %v1040_v55 = vpack.c.bf16 %v293_v49, %v291_v47  ;;  %v914_v56 = vpack.c.bf16 %v170_v51, %v168_v50  ;;  %v313_v47 = vld [vmem:[#allocation5 + $0x7b0] sm:$0xff]  ;;  %v190_v49 = vld [vmem:[#allocation5 + $0x3d8] sm:$0xff]  ;;  %v316_v50 = vld [vmem:[#allocation5 + $0x7c8] sm:$0xff] }
  0x8b   :  { %1023 = vmatprep.subr.bf16.mxu0 %v1022_v60  ;;  %v1042_v60 = vpack.c.bf16 %v298_v53, %v296_v52  ;;  %v318_v51 = vld [vmem:[#allocation5 + $0x7d8] sm:$0xff]  ;;  %v1060_v53 = vpack.c.bf16 %v313_v47, %v311_v45  ;;  %v642_v29 = vld [vmem:[#allocation7 + $0x20] sm:$0xff]  ;;  %v667_v47 = vld [vmem:[#allocation7 + $0xe8] sm:$0xff] }
  0x8c   :  { %v662_v37 = vld [vmem:[#allocation7 + $0xc0] sm:$0xff] }
  0x8d   :  { %897 = vmatpush1.bf16.msra.mxu1 %v896_v2  ;;  %v916_v2 = vpack.c.bf16 %v169_v58, %v167_v57  ;;  %v315_v57 = vld [vmem:[#allocation5 + $0x7c0] sm:$0xff]  ;;  %v1062_v58 = vpack.c.bf16 %v318_v51, %v316_v50  ;;  %v651_v50 = vld [vmem:[#allocation7 + $0x68] sm:$0xff] }
  0x8e   :  { %1025 = vmatpush1.bf16.msra.mxu0 %v1024_v3  ;;  %899 = vmatprep.subr.bf16.mxu1 %v898_v4  ;;  %v1044_v3 = vpack.c.bf16 %v297_v61, %v295_v59  ;;  %v918_v4 = vpack.c.bf16 %v174_v63, %v172_v62  ;;  %v317_v59 = vld [vmem:[#allocation5 + $0x7d0] sm:$0xff]  ;;  %v194_v61 = vld [vmem:[#allocation5 + $0x3f8] sm:$0xff]  ;;  %v320_v62 = vld [vmem:[#allocation5 + $0x7e8] sm:$0xff] }
  0x8f   :  { %1027 = vmatprep.subr.bf16.mxu0 %v1026_v8  ;;  %v1046_v8 = vpack.c.bf16 %v302_v1, %v300_v0  ;;  %v322_v63 = vld [vmem:[#allocation5 + $0x7f8] sm:$0xff]  ;;  %v1064_v1 = vpack.c.bf16 %v317_v59, %v315_v57 }
  0x91   :  { %901 = vmatpush1.bf16.msra.mxu1 %v900_v14  ;;  %v920_v14 = vpack.c.bf16 %v173_v6, %v171_v5  ;;  %v319_v5 = vld [vmem:[#allocation5 + $0x7e0] sm:$0xff]  ;;  %v1066_v6 = vpack.c.bf16 %v322_v63, %v320_v62 }
  0x92   :  { %1029 = vmatpush1.bf16.msra.mxu0 %v1028_v18  ;;  %903 = vmatprep.subr.bf16.mxu1 %v902_v19  ;;  %v175_v18 = vld [vmem:[#allocation5 + $0x360] sm:$0xff]  ;;  %v177_v19 = vld [vmem:[#allocation5 + $0x370] sm:$0xff]  ;;  %v1068_v11 = vpack.c.bf16 %v321_v7, %v319_v5 }
  0x93   :  { %1031 = vmatprep.subr.bf16.mxu0 %v1030_v24  ;;  %v180_v24 = vld [vmem:[#allocation5 + $0x388] sm:$0xff]  ;;  %v924_v30 = vpack.c.bf16 %v177_v19, %v175_v18 }
  0x95   :  { %905 = vmatpush1.bf16.msra.mxu1 %v904_v32  ;;  %v926_v32 = vpack.c.bf16 %v182_v25, %v180_v24  ;;  %v659_v24 = vld [vmem:[#allocation7 + $0xa8] sm:$0xff] }
  0x96   :  { %1033 = vmatpush1.bf16.msra.mxu0 %v1032_v33  ;;  %907 = vmatprep.subr.bf16.mxu1 %v906_v34  ;;  %v179_v33 = vld [vmem:[#allocation5 + $0x380] sm:$0xff]  ;;  %v181_v34 = vld [vmem:[#allocation5 + $0x390] sm:$0xff]  ;;  %v1078_v28 = vpack.c.bf16 %v659_v24, %v658_v23 }
  0x97   :  { %1035 = vmatprep.subr.bf16.mxu0 %v1034_v38  ;;  %v184_v38 = vld [vmem:[#allocation5 + $0x3a8] sm:$0xff]  ;;  %v928_v42 = vpack.c.bf16 %v181_v34, %v179_v33 }
  0x99   :  { %909 = vmatpush1.bf16.msra.mxu1 %v908_v43  ;;  %v930_v43 = vpack.c.bf16 %v186_v39, %v184_v38  ;;  %v663_v38 = vld [vmem:[#allocation7 + $0xc8] sm:$0xff]  ;;  %v646_v39 = vld [vmem:[#allocation7 + $0x40] sm:$0xff] }
  0x9a   :  { %1037 = vmatpush1.bf16.msra.mxu0 %v1036_v20  ;;  %911 = vmatprep.subr.bf16.mxu1 %v910_v44  ;;  %v183_v20 = vld [vmem:[#allocation5 + $0x3a0] sm:$0xff]  ;;  %v185_v44 = vld [vmem:[#allocation5 + $0x3b0] sm:$0xff] }
  0x9b   :  { %1039 = vmatprep.subr.bf16.mxu0 %v1038_v48  ;;  %v188_v48 = vld [vmem:[#allocation5 + $0x3c8] sm:$0xff]  ;;  %v932_v52 = vpack.c.bf16 %v185_v44, %v183_v20  ;;  %v648_v20 = vld [vmem:[#allocation7 + $0x50] sm:$0xff]  ;;  %v649_v44 = vld [vmem:[#allocation7 + $0x58] sm:$0xff] }
  0x9c   :  { %v1092_v45 = vpack.c.bf16 %v649_v44, %v648_v20 }
  0x9d   :  { %913 = vmatpush1.bf16.msra.mxu1 %v912_v54  ;;  %v934_v54 = vpack.c.bf16 %v190_v49, %v188_v48  ;;  %v650_v49 = vld [vmem:[#allocation7 + $0x60] sm:$0xff] }
  0x9e   :  { %1041 = vmatpush1.bf16.msra.mxu0 %v1040_v55  ;;  %915 = vmatprep.subr.bf16.mxu1 %v914_v56  ;;  %v187_v55 = vld [vmem:[#allocation5 + $0x3c0] sm:$0xff]  ;;  %v189_v56 = vld [vmem:[#allocation5 + $0x3d0] sm:$0xff]  ;;  %v1096_v51 = vpack.c.bf16 %v651_v50, %v650_v49 }
  0x9f   :  { %1043 = vmatprep.subr.bf16.mxu0 %v1042_v60  ;;  %v192_v60 = vld [vmem:[#allocation5 + $0x3e8] sm:$0xff]  ;;  %v936_v0 = vpack.c.bf16 %v189_v56, %v187_v55  ;;  %v652_v55 = vld [vmem:[#allocation7 + $0x70] sm:$0xff]  ;;  %v653_v56 = vld [vmem:[#allocation7 + $0x78] sm:$0xff] }
  0xa0   :  { %v1100_v57 = vpack.c.bf16 %v653_v56, %v652_v55 }
  0xa1   :  { %917 = vmatpush1.bf16.msra.mxu1 %v916_v2  ;;  %v938_v2 = vpack.c.bf16 %v194_v61, %v192_v60  ;;  %v323_v61 = vld [vmem:[%s1373_s2] sm:$0x3]  ;;  %s1189_s2 = scalar_lea.vmem %s755_s13, 128 }
  0xa2   :  { %1045 = vmatpush1.bf16.msra.mxu0 %v1044_v3  ;;  %919 = vmatprep.subr.bf16.mxu1 %v918_v4  ;;  %v191_v3 = vld [vmem:[#allocation5 + $0x3e0] sm:$0xff]  ;;  %v193_v4 = vld [vmem:[#allocation5 + $0x3f0] sm:$0xff]  ;;  %p1190_p10 = scmp.ne.s32.totalorder %s755_s13, %s1189_s2  ;;  %p1195_p12 = scmp.lt.s32.totalorder %s1189_s2, %s1189_s2 }
  0xa3   :  { %1047 = vmatprep.subr.bf16.mxu0 %v1046_v8  ;;  %v654_v8 = vld [vmem:[#allocation7 + $0x80] sm:$0xff]  ;;  %v940_v10 = vpack.c.bf16 %v193_v4, %v191_v3 }
  0xa4   :  { %v1070_v12 = vpack.c.bf16 %v655_v9, %v654_v8  ;;  %p1196_p13 = por %p1195_p12, %p1194_p11 }
  0xa5   :  { %921 = vmatpush1.bf16.msra.mxu1 %v920_v14  ;;  %v639_v14 = vld [vmem:[#allocation7 + $0x8] sm:$0xff] }
  0xa6   :  { %1049 = vmatpush1.bf16.msra.mxu0 %v1048_v15  ;;  %923 = vmatprep.subr.bf16.mxu1 %v922_v17  ;;  %v656_v15 = vld [vmem:[#allocation7 + $0x90] sm:$0xff]  ;;  %v657_v17 = vld [vmem:[#allocation7 + $0x98] sm:$0xff]  ;;  %v1072_v18 = vpack.c.bf16 %v639_v14, %v638_v13  ;;  %p1197_p0 = pnand %p1196_p13, %p1190_p10 }
  0xa7   :  { %1051 = vmatprep.subr.bf16.mxu0 %v1050_v22  ;;  %v1074_v19 = vpack.c.bf16 %v657_v17, %v656_v15  ;;  %v641_v22 = vld [vmem:[#allocation7 + $0x18] sm:$0xff] }
  0xa8   :  { %v1076_v25 = vpack.c.bf16 %v641_v22, %v640_v21 }
  0xa9   :  { %925 = vmatpush1.bf16.msra.mxu1 %v924_v30  ;;  %v643_v30 = vld [vmem:[#allocation7 + $0x28] sm:$0xff] }
  0xaa   :  { %1053 = vmatpush1.bf16.msra.mxu0 %v1052_v31  ;;  %927 = vmatprep.subr.bf16.mxu1 %v926_v32  ;;  %v660_v31 = vld [vmem:[#allocation7 + $0xb0] sm:$0xff]  ;;  %v661_v32 = vld [vmem:[#allocation7 + $0xb8] sm:$0xff]  ;;  %v1080_v33 = vpack.c.bf16 %v643_v30, %v642_v29 }
  0xab   :  { %1055 = vmatprep.subr.bf16.mxu0 %v1054_v36  ;;  %v1082_v34 = vpack.c.bf16 %v661_v32, %v660_v31  ;;  %v645_v36 = vld [vmem:[#allocation7 + $0x38] sm:$0xff] }
  0xad   :  { %929 = vmatpush1.bf16.msra.mxu1 %v928_v42  ;;  %v665_v42 = vld [vmem:[#allocation7 + $0xd8] sm:$0xff] }
  0xae   :  { %1057 = vmatpush1.bf16.msra.mxu0 %v1056_v16  ;;  %931 = vmatprep.subr.bf16.mxu1 %v930_v43  ;;  %v1088_v16 = vpack.c.bf16 %v647_v40, %v646_v39  ;;  %v1090_v43 = vpack.c.bf16 %v665_v42, %v664_v41 }
  0xaf   :  { %1059 = vmatprep.subr.bf16.mxu0 %v1058_v46  ;;  %v666_v46 = vld [vmem:[#allocation7 + $0xe0] sm:$0xff] }
  0xb0   :  { %v1094_v48 = vpack.c.bf16 %v667_v47, %v666_v46 }
  0xb1   :  { %933 = vmatpush1.bf16.msra.mxu1 %v932_v52  ;;  %v668_v52 = vld [vmem:[#allocation7 + $0xf0] sm:$0xff] }
  0xb2   :  { %1061 = vmatpush1.bf16.msra.mxu0 %v1060_v53  ;;  %935 = vmatprep.subr.bf16.mxu1 %v934_v54  ;;  %v669_v53 = vld [vmem:[#allocation7 + $0xf8] sm:$0xff] }
  0xb3   :  { %1063 = vmatprep.subr.bf16.mxu0 %v1062_v58  ;;  %v1098_v54 = vpack.c.bf16 %v669_v53, %v668_v52  ;;  %v325_v58 = vlaneseq }
  0xb5   :  { %937 = vmatpush1.bf16.msra.mxu1 %v936_v0  ;;  %v326_v59 = vshrl.u32 %v325_v58, 7 }
  0xb6   :  { %1065 = vmatpush1.bf16.msra.mxu0 %v1064_v1  ;;  %939 = vmatprep.subr.bf16.mxu1 %v938_v2 }
  0xb7   :  { %1067 = vmatprep.subr.bf16.mxu0 %v1066_v6  ;;  %v327_v60 = vsub.s32 0, %v326_v59  ;;  %v331_v62 = vsub.s32 1, %v326_v59 }
  0xb9   :  { %941 = vmatpush1.bf16.msra.mxu1 %v940_v10  ;;  %v328_v63 = vrot.slane %v323_v61, %v327_v60  ;;  %v332_v0 = vrot.slane %v323_v61, %v331_v62 }
  0xba   :  { %1069 = vmatpush1.bf16.msra.mxu0 %v1068_v11  ;;  %1071 = vmatprep.subr.bf16.mxu1 %v1070_v12 }
  0xbc   :  { %483 = vmatmul.mubr.f32.vlgmr.msra.gmra.mrb[0].mxu1 %v1331_v26  ;;  %v1084_v26 = vpack.c.bf16 %v645_v36, %v644_v35 }
  0xbd   :  { %625 = vmatmul.mubr.f32.vlgmr.msra.gmra.mrb[0].mxu0 %v1333_v27  ;;  %1073 = vmatpush3.bf16.msra.mxu1 %v1072_v18  ;;  %v1086_v27 = vpack.c.bf16 %v663_v38, %v662_v37 }
  0xbe   :  { %1075 = vmatprep.subr.bf16.mxu1 %v1074_v19 }
  0xc1   :  { %1077 = vmatpush3.bf16.msra.mxu1 %v1076_v25 }
  0xc2   :  { %1079 = vmatprep.subr.bf16.mxu1 %v1078_v28 }
  0xc5   :  { %1081 = vmatpush3.bf16.msra.mxu1 %v1080_v33 }
  0xc6   :  { %1083 = vmatprep.subr.bf16.mxu1 %v1082_v34 }
  0xc9   :  { %1085 = vmatpush3.bf16.msra.mxu1 %v1084_v26 }
  0xca   :  { %1087 = vmatprep.subr.bf16.mxu1 %v1086_v27 }
  0xcd   :  { %1089 = vmatpush3.bf16.msra.mxu1 %v1088_v16 }
  0xce   :  { %1091 = vmatprep.subr.bf16.mxu1 %v1090_v43 }
  0xd1   :  { %1093 = vmatpush3.bf16.msra.mxu1 %v1092_v45 }
  0xd2   :  { %1095 = vmatprep.subr.bf16.mxu1 %v1094_v48 }
  0xd5   :  { %1097 = vmatpush3.bf16.msra.mxu1 %v1096_v51 }
  0xd6   :  { %1099 = vmatprep.subr.bf16.mxu1 %v1098_v54 }
  0xd9   :  { %1101 = vmatpush3.bf16.msra.mxu1 %v1100_v57 }
 0x18f   :  { %v484_v1 = vpop.f32.mrb[0].mxu1 }
 0x190   :  { %v1102_v2 = vadd.f32 %v484_v1, %v328_v63  ;;  %v626_v3 = vpop.f32.mrb[0].mxu0  ;;  %v486_v4 = vpop.f32.mrb[1].mxu1 }
 0x191   :  { %v1104_v5 = vadd.f32 %v486_v4, %v332_v0  ;;  %v628_v6 = vpop.f32.mrb[1].mxu0 }
 0x192   :  { %v1103_v7 = vadd.f32 %v1102_v2, %v626_v3 }
 0x193   :  { %v1105_v8 = vadd.f32 %v1104_v5, %v628_v6 }
 0x194   :  { %v631_v9 = vmax.f32 %v1103_v7, 0.0 }
 0x195   :  { %v632_v10 = vmax.f32 %v1105_v8, 0.0 }
 0x197   :  { %v635_v11 = vcombine.low %v631_v9, %v632_v10  ;;  %741 = vmatprep.mubr.f32.mxu1 %v632_v10 }
 0x198   :  { %742 = vmatmul.mubr.f32.vlgmr.msra.gmra.mrb[2].mxu1 %v631_v9 }
 0x199   :  { %637 = vst [vmem:[#allocation8] sm:$0xff] %v635_v11 }
 0x19a   :  { %1200 = shalt.err (!%p1197_p0)
}
 0x19b   :  { %s1201_s16 = scalar_lea.hbm %s1376_s5, 128 }
 0x19c   :  { %p1202_p1 = scmp.ne.s32.totalorder %s1376_s5, %s1201_s16  ;;  %p1205_p2 = scmp.lt.u32.totalorder %s1201_s16, %s1376_s5 }
 0x19e   :  { %p1207_p3 = pnand %p1205_p2, %p1202_p1 }
 0x1a0   :  { %1210 = shalt.err (!%p1207_p3)
}
 0x1a1   :  { %757 = dma.vmem_to_hbm [thread:$0]  %s755_s13, 128, %s1376_s5, [#allocation4]   ;;  %v778_v13 = vld [vmem:[%s1375_s4] ss:$0 sm:$0xff] }
 0x1a2   :  { %s1249_s24 = smov [#allocation9]  }
 0x1a3   :  { %s764_s25 = sshll.u32 %s1249_s24, 4  ;;  %s765_s25 = int_to_ptr.vmem [resolvable:$true] %s764_s25 }
 0x1a4   :  { %s1211_s26 = scalar_lea.vmem %s765_s25, 64  ;;  %p1216_p5 = scmp.lt.s32.totalorder %s765_s25, %s765_s25 }
 0x1a5   :  { %p1212_p4 = scmp.ne.s32.totalorder %s765_s25, %s1211_s26  ;;  %p1217_p6 = scmp.lt.s32.totalorder %s1211_s26, %s1211_s26 }
 0x1a7   :  { %p1218_p7 = por %p1217_p6, %p1216_p5 }
 0x1a9   :  { %p1219_p8 = pnand %p1218_p7, %p1212_p4 }
 0x26b   :  { %v811_v12 = vpop.f32.mrb[2].mxu1 }
 0x26c   :  { %v812_v14 = vpop.f32.mrb[3].mxu1 }
 0x26d   :  { %v813_v15 = vadd.f32 %v812_v14, %v811_v12 }
 0x26f   :  { %v744_v17 = vadd.f32 %v813_v15, %v778_v13 }
 0x271   :  { %747 = vst [vmem:[#allocation9] sm:$0xf] %v744_v17 }
 0x272   :  { %1222 = shalt.err (!%p1219_p8)
}
 0x273   :  { %s1223_s28 = scalar_lea.hbm %s1377_s6, 64 }
 0x274   :  { %p1224_p9 = scmp.ne.s32.totalorder %s1377_s6, %s1223_s28  ;;  %p1227_p10 = scmp.lt.u32.totalorder %s1223_s28, %s1377_s6 }
 0x276   :  { %p1229_p11 = pnand %p1227_p10, %p1224_p9 }
 0x278   :  { %1232 = shalt.err (!%p1229_p11)
}
 0x279   :  { %767 = dma.vmem_to_hbm [thread:$0]  %s765_s25, 64, %s1377_s6, [#allocation10]  }
 0x27a   :  { %1237 = dma.done.wait [#allocation4], 128  }
 0x27b   :  { %1238 = vsyncadd [#allocation4], 4294967168 }
 0x27c   :  { %1239 = dma.done.wait [#allocation10], 64  }
 0x27d   :  { %1240 = vsyncadd [#allocation10], 4294967232 }
 0x27e   :  { %774 = vsyncpa [#allocation3], 1 }
 0x27f   :  { %775 = vsyncpa [#allocation6], 1 }
 0x280   :  { %776 = vsyncpa [#allocation4], 1 }
 0x281   :  { %777 = vsyncpa [#allocation10], 1 }

</bundles_post_ra>
